<compile_context>
chip_gen: v7x
topology: tpu7x:2x2x1
jax: 0.10.0
libtpu: 0.0.40
codegen_flags: <defaults>
</compile_context>

<pallas_src>
import functools
import math

import jax
import jax.numpy as jnp
from jax.experimental import pallas as pl
from jax.experimental.pallas import tpu as pltpu


# ---------------------------------------------------------------------------
# Per-block weight tuple layout (PyTorch-native (out, in) orientation):
#   [wx1 (H0,dim), wt1 (H0,1), b1 (H0,1),
#    (w_j (H_j,H_{j-1}), b_j (H_j,1)) * (n_hidden-1),
#    w_out (dim,H_last), b_out (dim,1), scale (dim,1)]
# ---------------------------------------------------------------------------


def _make_fused_kernel(n_blocks, n_hidden, mm_dtype):
    """Kernel over one lane-dense activation tile (dim, TN), all blocks fused."""

    def kernel(*refs):
        xT_ref, tT_ref = refs[0], refs[1]
        w_refs = refs[2:-1]
        out_ref = refs[-1]

        # Stacked weight refs, leading axis = block index.
        wx1_ref, wt1_ref, b1_ref = w_refs[0], w_refs[1], w_refs[2]
        hidden_refs = w_refs[3:3 + 2 * (n_hidden - 1)]
        wout_ref, bout_ref, scale_ref = w_refs[3 + 2 * (n_hidden - 1):]

        x = xT_ref[...]                          # (dim, TN) f32, lane-dense
        t = tT_ref[...]                          # (1, TN)   f32

        # Static unroll over all residual blocks; activations never leave
        # vregs/VMEM between blocks.
        for b in range(n_blocks):
            wx1 = wx1_ref[b]                     # (H0, dim)  mm_dtype
            wt1 = wt1_ref[b]                     # (H0, 1)    f32
            b1 = b1_ref[b]                       # (H0, 1)    f32

            # First linear on concat([x, t]) without an actual concat:
            #   W1 @ [x; t] == W1[:, :dim] @ x + W1[:, dim:] * t
            h = jnp.dot(wx1, x.astype(mm_dtype),
                        preferred_element_type=jnp.float32)
            h = jnp.maximum(h + wt1 * t + b1, 0.0)          # ReLU (f32 VPU)

            for j in range(n_hidden - 1):                   # hidden layers
                w = hidden_refs[2 * j][b]                   # (H, H) mm_dtype
                bb = hidden_refs[2 * j + 1][b]              # (H, 1) f32
                h = jnp.maximum(
                    jnp.dot(w, h.astype(mm_dtype),
                            preferred_element_type=jnp.float32) + bb, 0.0)

            w_out = wout_ref[b]                             # (dim, H) mm_dtype
            b_out = bout_ref[b]                             # (dim, 1) f32
            scale = scale_ref[b]                            # (dim, 1) f32
            g = jnp.dot(w_out, h.astype(mm_dtype),
                        preferred_element_type=jnp.float32) + b_out

            # TimeTanh gate: tanh(scale * t) — scale differs per block, so
            # the small (dim, TN) broadcast + tanh (EUP slot) is per-block.
            phi = jnp.tanh(scale * t)
            x = x + phi * g                                 # residual (f32)

        out_ref[...] = x

    return kernel


# ---------------------------------------------------------------------------
# Forward pass wrapper: one fused pallas_call over lane-dense column tiles
# ---------------------------------------------------------------------------
@functools.partial(jax.jit, static_argnames=("n_hidden", "tile_n", "use_bf16"))
def resnet_flow_forward(params, x, t, n_hidden, tile_n=1024, use_bf16=False):
    # x: (B, S, dim) or (B, 1, dim); t: (B, S, 1)
    if x.shape[-2] == 1:
        x = jnp.repeat(x, t.shape[-2], axis=-2)   # repeat_interleave(dim=-2)
    B, S, dim = x.shape
    N = B * S

    # Transposed (lane-dense) activation layout: N on the lane axis.
    xT = x.reshape(N, dim).T.astype(jnp.float32)   # (dim, N)
    tT = t.reshape(N, 1).T.astype(jnp.float32)     # (1, N)

    # Column tile: multiple of 128, clamped for tiny inputs.
    tile_n = max(128, min(tile_n, ((N + 127) // 128) * 128))
    n_pad = (-N) % tile_n
    if n_pad:
        xT = jnp.pad(xT, ((0, 0), (0, n_pad)))
        tT = jnp.pad(tT, ((0, 0), (0, n_pad)))
    n_padded = N + n_pad

    # Stack per-block weights by role (leading axis = block). Matmul weights
    # optionally bf16 (MXU); biases / time-scale stay f32 (VPU / EUP path).
    mm_dtype = jnp.bfloat16 if use_bf16 else jnp.float32
    n_blocks = len(params)

    def stack(idx, dtype):
        return jnp.stack([blk[idx] for blk in params]).astype(dtype)

    stacked = [stack(0, mm_dtype),                 # wx1   (nb, H0, dim)
               stack(1, jnp.float32),              # wt1   (nb, H0, 1)
               stack(2, jnp.float32)]              # b1    (nb, H0, 1)
    for j in range(n_hidden - 1):
        stacked.append(stack(3 + 2 * j, mm_dtype))      # w_j (nb, H, H)
        stacked.append(stack(4 + 2 * j, jnp.float32))   # b_j (nb, H, 1)
    idx_out = 3 + 2 * (n_hidden - 1)
    stacked += [stack(idx_out, mm_dtype),          # w_out (nb, dim, H)
                stack(idx_out + 1, jnp.float32),   # b_out (nb, dim, 1)
                stack(idx_out + 2, jnp.float32)]   # scale (nb, dim, 1)

    def replicated_spec(shape):
        nd = len(shape)

        def idx_map(i):
            return (0,) * nd

        return pl.BlockSpec(shape, idx_map)

    in_specs = [
        pl.BlockSpec((dim, tile_n), lambda i: (0, i)),      # x^T tile
        pl.BlockSpec((1, tile_n), lambda i: (0, i)),        # t^T tile
    ] + [replicated_spec(w.shape) for w in stacked]
    out_spec = pl.BlockSpec((dim, tile_n), lambda i: (0, i))

    outT = pl.pallas_call(
        _make_fused_kernel(n_blocks, n_hidden, mm_dtype),
        out_shape=jax.ShapeDtypeStruct((dim, n_padded), jnp.float32),
        grid_spec=pltpu.PrefetchScalarGridSpec(
            num_scalar_prefetch=0,
            grid=(n_padded // tile_n,),
            in_specs=in_specs,
            out_specs=out_spec,
        ),
        compiler_params=pltpu.CompilerParams(
            dimension_semantics=("parallel",)),
    )(xT, tT, *stacked)

    return outT[:, :N].T.reshape(B, S, dim)


# ---------------------------------------------------------------------------
# Parameter setup (deterministic, synthetic)
# ---------------------------------------------------------------------------
def _init_block(key, dim, hidden_dims):
    """One residual block: MLP(dim+1 -> hidden_dims -> dim) + TimeTanh scale."""
    dims = [dim + 1] + list(hidden_dims) + [dim]
    keys = jax.random.split(key, 2 * (len(dims) - 1) + 1)
    ws, bs = [], []
    for li in range(len(dims) - 1):
        fan_in = dims[li]
        bound = 1.0 / math.sqrt(fan_in)
        # PyTorch Linear native layout: weight (out, in), y = W @ x + b.
        w = jax.random.uniform(keys[2 * li], (dims[li + 1], dims[li]),
                               jnp.float32, -bound, bound)
        # invertible=True => nn.utils.spectral_norm on every Linear.
        # TODO(synk): PyTorch uses a running power-iteration estimate of sigma;
        # here we normalize once with the exact top singular value.
        w = w / jnp.linalg.svd(w, compute_uv=False)[0]
        b = jax.random.uniform(keys[2 * li + 1], (dims[li + 1], 1),
                               jnp.float32, -bound, bound)
        ws.append(w)
        bs.append(b)
    scale = jax.random.normal(keys[-1], (dim, 1), jnp.float32)  # TimeTanh w

    w1 = ws[0]                                               # (H0, dim+1)
    weights = [w1[:, :dim], w1[:, dim:dim + 1], bs[0]]       # wx1, wt1, b1
    for li in range(1, len(dims) - 2):
        weights += [ws[li], bs[li]]
    weights += [ws[-1], bs[-1], scale]
    return tuple(weights)


def init_resnet_flow(key, dim, n_layers, hidden_dims):
    # Outer module builds n_layers inner st.net.ResNetFlow's, each with
    # n_layers blocks => n_layers**2 blocks applied sequentially.
    n_blocks = n_layers * n_layers
    keys = jax.random.split(key, n_blocks)
    return [_init_block(k, dim, hidden_dims) for k in keys]


# ---------------------------------------------------------------------------
# Pure-JAX reference (row-major layout, correctness check only)
# ---------------------------------------------------------------------------
def _ref_block(x2d, t2d, weights, n_hidden):
    wx1, wt1, b1 = weights[0], weights[1], weights[2]
    h = jnp.maximum(x2d @ wx1.T + t2d * wt1.T + b1.T, 0.0)
    idx = 3
    for _ in range(n_hidden - 1):
        w, b = weights[idx], weights[idx + 1]
        idx += 2
        h = jnp.maximum(h @ w.T + b.T, 0.0)
    w_out, b_out, scale = weights[idx], weights[idx + 1], weights[idx + 2]
    g = h @ w_out.T + b_out.T
    return x2d + jnp.tanh(t2d * scale.T) * g


def _ref_forward(params, x, t, n_hidden):
    if x.shape[-2] == 1:
        x = jnp.repeat(x, t.shape[-2], axis=-2)
    B, S, dim = x.shape
    x2d = x.reshape(B * S, dim).astype(jnp.float32)
    t2d = t.reshape(B * S, 1).astype(jnp.float32)
    for weights in params:
        x2d = _ref_block(x2d, t2d, weights, n_hidden)
    return x2d.reshape(B, S, dim)


if __name__ == "__main__":
    dim = 4
    n_layers = 2
    hidden_dims = [32, 32]
    batch, seq = 2, 8

    key = jax.random.PRNGKey(0)
    kx, kt, kp = jax.random.split(key, 3)

    # x has seq dim 1 to exercise the repeat_interleave path of forward().
    x = jax.random.normal(kx, (batch, 1, dim), jnp.float32)
    t = jax.random.uniform(kt, (batch, seq, 1), jnp.float32)

    params = init_resnet_flow(kp, dim, n_layers, hidden_dims)
    n_hidden = len(hidden_dims)

    ref = _ref_forward(params, x, t, n_hidden)

    # f32 path (exact check).
    out = resnet_flow_forward(params, x, t, n_hidden=n_hidden)
    out = jax.block_until_ready(out)
    assert out.shape == (batch, seq, dim)
    assert jnp.allclose(out, ref, atol=1e-4, rtol=1e-4), "f32 mismatch vs ref"

    # bf16-matmul path (v6e/v7x MXU optimization; elementwise stays f32).
    out_bf16 = jax.block_until_ready(
        resnet_flow_forward(params, x, t, n_hidden=n_hidden, use_bf16=True))
    assert jnp.allclose(out_bf16, ref, atol=5e-2, rtol=5e-2), "bf16 mismatch vs ref"

    print("KERNEL_OK")
</pallas_src>

<mosaic_0001>
module attributes {stable_mosaic.version = 11 : i64} {
  func.func @kernel(%arg0: i32, %arg1: memref<4x128xf32, #tpu.memory_space<vmem>>, %arg2: memref<1x128xf32, #tpu.memory_space<vmem>>, %arg3: memref<4x32x4xf32, #tpu.memory_space<vmem>>, %arg4: memref<4x32x1xf32, #tpu.memory_space<vmem>>, %arg5: memref<4x32x1xf32, #tpu.memory_space<vmem>>, %arg6: memref<4x32x32xf32, #tpu.memory_space<vmem>>, %arg7: memref<4x32x1xf32, #tpu.memory_space<vmem>>, %arg8: memref<4x4x32xf32, #tpu.memory_space<vmem>>, %arg9: memref<4x4x1xf32, #tpu.memory_space<vmem>>, %arg10: memref<4x4x1xf32, #tpu.memory_space<vmem>>, %arg11: memref<4x128xf32, #tpu.memory_space<vmem>>) attributes {dimension_semantics = [#tpu.dimension_semantics<parallel>], iteration_bounds = array<i64: 1>, scalar_prefetch = 0 : i64, scratch_operands = 0 : i64, tpu.core_type = #tpu.core_type<tc>, window_params = [{transform_indices = @transform_0, window_bounds = array<i64: 4, 128>}, {transform_indices = @transform_1, window_bounds = array<i64: 1, 128>}, {pipeline_mode = #tpu.pipeline_mode<synchronous>, transform_indices = @transform_2, window_bounds = array<i64: 4, 32, 4>}, {pipeline_mode = #tpu.pipeline_mode<synchronous>, transform_indices = @transform_3, window_bounds = array<i64: 4, 32, 1>}, {pipeline_mode = #tpu.pipeline_mode<synchronous>, transform_indices = @transform_4, window_bounds = array<i64: 4, 32, 1>}, {pipeline_mode = #tpu.pipeline_mode<synchronous>, transform_indices = @transform_5, window_bounds = array<i64: 4, 32, 32>}, {pipeline_mode = #tpu.pipeline_mode<synchronous>, transform_indices = @transform_6, window_bounds = array<i64: 4, 32, 1>}, {pipeline_mode = #tpu.pipeline_mode<synchronous>, transform_indices = @transform_7, window_bounds = array<i64: 4, 4, 32>}, {pipeline_mode = #tpu.pipeline_mode<synchronous>, transform_indices = @transform_8, window_bounds = array<i64: 4, 4, 1>}, {pipeline_mode = #tpu.pipeline_mode<synchronous>, transform_indices = @transform_9, window_bounds = array<i64: 4, 4, 1>}, {transform_indices = @transform_10, window_bounds = array<i64: 4, 128>}]} {
    %c0 = arith.constant 0 : index
    %c0_0 = arith.constant 0 : index
    %0 = vector.load %arg1[%c0, %c0_0] : memref<4x128xf32, #tpu.memory_space<vmem>>, vector<4x128xf32>
    %c0_1 = arith.constant 0 : index
    %c0_2 = arith.constant 0 : index
    %1 = vector.load %arg2[%c0_1, %c0_2] : memref<1x128xf32, #tpu.memory_space<vmem>>, vector<1x128xf32>
    %c0_3 = arith.constant 0 : index
    %c0_4 = arith.constant 0 : index
    %c0_5 = arith.constant 0 : index
    %2 = vector.load %arg3[%c0_3, %c0_4, %c0_5] : memref<4x32x4xf32, #tpu.memory_space<vmem>>, vector<1x32x4xf32>
    %3 = vector.shape_cast %2 : vector<1x32x4xf32> to vector<32x4xf32>
    %c0_6 = arith.constant 0 : index
    %c0_7 = arith.constant 0 : index
    %c0_8 = arith.constant 0 : index
    %4 = vector.load %arg4[%c0_6, %c0_7, %c0_8] : memref<4x32x1xf32, #tpu.memory_space<vmem>>, vector<1x32x1xf32>
    %5 = vector.shape_cast %4 : vector<1x32x1xf32> to vector<32x1xf32>
    %c0_9 = arith.constant 0 : index
    %c0_10 = arith.constant 0 : index
    %c0_11 = arith.constant 0 : index
    %6 = vector.load %arg5[%c0_9, %c0_10, %c0_11] : memref<4x32x1xf32, #tpu.memory_space<vmem>>, vector<1x32x1xf32>
    %7 = vector.shape_cast %6 : vector<1x32x1xf32> to vector<32x1xf32>
    %cst = arith.constant dense<0.000000e+00> : vector<32x128xf32>
    %8 = tpu.matmul %3, %0, %cst {dimension_numbers = #tpu.dot_dimension_numbers<[1], [0], [0], [1], [0, 0, 1, 1], [], []>} : vector<32x4xf32>, vector<4x128xf32>, vector<32x128xf32> -> vector<32x128xf32>
    %9 = vector.broadcast %5 : vector<32x1xf32> to vector<32x128xf32>
    %10 = vector.broadcast %1 : vector<1x128xf32> to vector<32x128xf32>
    %11 = arith.mulf %9, %10 : vector<32x128xf32>
    %12 = arith.addf %8, %11 : vector<32x128xf32>
    %13 = vector.broadcast %7 : vector<32x1xf32> to vector<32x128xf32>
    %14 = arith.addf %12, %13 : vector<32x128xf32>
    %cst_12 = arith.constant 0.000000e+00 : f32
    %15 = vector.broadcast %cst_12 : f32 to vector<32x128xf32>
    %16 = arith.maximumf %14, %15 : vector<32x128xf32>
    %c0_13 = arith.constant 0 : index
    %c0_14 = arith.constant 0 : index
    %c0_15 = arith.constant 0 : index
    %17 = vector.load %arg6[%c0_13, %c0_14, %c0_15] : memref<4x32x32xf32, #tpu.memory_space<vmem>>, vector<1x32x32xf32>
    %18 = vector.shape_cast %17 : vector<1x32x32xf32> to vector<32x32xf32>
    %c0_16 = arith.constant 0 : index
    %c0_17 = arith.constant 0 : index
    %c0_18 = arith.constant 0 : index
    %19 = vector.load %arg7[%c0_16, %c0_17, %c0_18] : memref<4x32x1xf32, #tpu.memory_space<vmem>>, vector<1x32x1xf32>
    %20 = vector.shape_cast %19 : vector<1x32x1xf32> to vector<32x1xf32>
    %cst_19 = arith.constant dense<0.000000e+00> : vector<32x128xf32>
    %21 = tpu.matmul %18, %16, %cst_19 {dimension_numbers = #tpu.dot_dimension_numbers<[1], [0], [0], [1], [0, 0, 1, 1], [], []>} : vector<32x32xf32>, vector<32x128xf32>, vector<32x128xf32> -> vector<32x128xf32>
    %22 = vector.broadcast %20 : vector<32x1xf32> to vector<32x128xf32>
    %23 = arith.addf %21, %22 : vector<32x128xf32>
    %cst_20 = arith.constant 0.000000e+00 : f32
    %24 = vector.broadcast %cst_20 : f32 to vector<32x128xf32>
    %25 = arith.maximumf %23, %24 : vector<32x128xf32>
    %c0_21 = arith.constant 0 : index
    %c0_22 = arith.constant 0 : index
    %c0_23 = arith.constant 0 : index
    %26 = vector.load %arg8[%c0_21, %c0_22, %c0_23] : memref<4x4x32xf32, #tpu.memory_space<vmem>>, vector<1x4x32xf32>
    %27 = vector.shape_cast %26 : vector<1x4x32xf32> to vector<4x32xf32>
    %c0_24 = arith.constant 0 : index
    %c0_25 = arith.constant 0 : index
    %c0_26 = arith.constant 0 : index
    %28 = vector.load %arg9[%c0_24, %c0_25, %c0_26] : memref<4x4x1xf32, #tpu.memory_space<vmem>>, vector<1x4x1xf32>
    %29 = vector.shape_cast %28 : vector<1x4x1xf32> to vector<4x1xf32>
    %c0_27 = arith.constant 0 : index
    %c0_28 = arith.constant 0 : index
    %c0_29 = arith.constant 0 : index
    %30 = vector.load %arg10[%c0_27, %c0_28, %c0_29] : memref<4x4x1xf32, #tpu.memory_space<vmem>>, vector<1x4x1xf32>
    %31 = vector.shape_cast %30 : vector<1x4x1xf32> to vector<4x1xf32>
    %cst_30 = arith.constant dense<0.000000e+00> : vector<4x128xf32>
    %32 = tpu.matmul %27, %25, %cst_30 {dimension_numbers = #tpu.dot_dimension_numbers<[1], [0], [0], [1], [0, 0, 1, 1], [], []>} : vector<4x32xf32>, vector<32x128xf32>, vector<4x128xf32> -> vector<4x128xf32>
    %33 = vector.broadcast %29 : vector<4x1xf32> to vector<4x128xf32>
    %34 = arith.addf %32, %33 : vector<4x128xf32>
    %35 = vector.broadcast %31 : vector<4x1xf32> to vector<4x128xf32>
    %36 = vector.broadcast %1 : vector<1x128xf32> to vector<4x128xf32>
    %37 = arith.mulf %35, %36 : vector<4x128xf32>
    %38 = math.tanh %37 : vector<4x128xf32>
    %39 = arith.mulf %38, %34 : vector<4x128xf32>
    %40 = arith.addf %0, %39 : vector<4x128xf32>
    %c1 = arith.constant 1 : index
    %c0_31 = arith.constant 0 : index
    %c0_32 = arith.constant 0 : index
    %41 = vector.load %arg3[%c1, %c0_31, %c0_32] : memref<4x32x4xf32, #tpu.memory_space<vmem>>, vector<1x32x4xf32>
    %42 = vector.shape_cast %41 : vector<1x32x4xf32> to vector<32x4xf32>
    %c1_33 = arith.constant 1 : index
    %c0_34 = arith.constant 0 : index
    %c0_35 = arith.constant 0 : index
    %43 = vector.load %arg4[%c1_33, %c0_34, %c0_35] : memref<4x32x1xf32, #tpu.memory_space<vmem>>, vector<1x32x1xf32>
    %44 = vector.shape_cast %43 : vector<1x32x1xf32> to vector<32x1xf32>
    %c1_36 = arith.constant 1 : index
    %c0_37 = arith.constant 0 : index
    %c0_38 = arith.constant 0 : index
    %45 = vector.load %arg5[%c1_36, %c0_37, %c0_38] : memref<4x32x1xf32, #tpu.memory_space<vmem>>, vector<1x32x1xf32>
    %46 = vector.shape_cast %45 : vector<1x32x1xf32> to vector<32x1xf32>
    %cst_39 = arith.constant dense<0.000000e+00> : vector<32x128xf32>
    %47 = tpu.matmul %42, %40, %cst_39 {dimension_numbers = #tpu.dot_dimension_numbers<[1], [0], [0], [1], [0, 0, 1, 1], [], []>} : vector<32x4xf32>, vector<4x128xf32>, vector<32x128xf32> -> vector<32x128xf32>
    %48 = vector.broadcast %44 : vector<32x1xf32> to vector<32x128xf32>
    %49 = vector.broadcast %1 : vector<1x128xf32> to vector<32x128xf32>
    %50 = arith.mulf %48, %49 : vector<32x128xf32>
    %51 = arith.addf %47, %50 : vector<32x128xf32>
    %52 = vector.broadcast %46 : vector<32x1xf32> to vector<32x128xf32>
    %53 = arith.addf %51, %52 : vector<32x128xf32>
    %cst_40 = arith.constant 0.000000e+00 : f32
    %54 = vector.broadcast %cst_40 : f32 to vector<32x128xf32>
    %55 = arith.maximumf %53, %54 : vector<32x128xf32>
    %c1_41 = arith.constant 1 : index
    %c0_42 = arith.constant 0 : index
    %c0_43 = arith.constant 0 : index
    %56 = vector.load %arg6[%c1_41, %c0_42, %c0_43] : memref<4x32x32xf32, #tpu.memory_space<vmem>>, vector<1x32x32xf32>
    %57 = vector.shape_cast %56 : vector<1x32x32xf32> to vector<32x32xf32>
    %c1_44 = arith.constant 1 : index
    %c0_45 = arith.constant 0 : index
    %c0_46 = arith.constant 0 : index
    %58 = vector.load %arg7[%c1_44, %c0_45, %c0_46] : memref<4x32x1xf32, #tpu.memory_space<vmem>>, vector<1x32x1xf32>
    %59 = vector.shape_cast %58 : vector<1x32x1xf32> to vector<32x1xf32>
    %cst_47 = arith.constant dense<0.000000e+00> : vector<32x128xf32>
    %60 = tpu.matmul %57, %55, %cst_47 {dimension_numbers = #tpu.dot_dimension_numbers<[1], [0], [0], [1], [0, 0, 1, 1], [], []>} : vector<32x32xf32>, vector<32x128xf32>, vector<32x128xf32> -> vector<32x128xf32>
    %61 = vector.broadcast %59 : vector<32x1xf32> to vector<32x128xf32>
    %62 = arith.addf %60, %61 : vector<32x128xf32>
    %cst_48 = arith.constant 0.000000e+00 : f32
    %63 = vector.broadcast %cst_48 : f32 to vector<32x128xf32>
    %64 = arith.maximumf %62, %63 : vector<32x128xf32>
    %c1_49 = arith.constant 1 : index
    %c0_50 = arith.constant 0 : index
    %c0_51 = arith.constant 0 : index
    %65 = vector.load %arg8[%c1_49, %c0_50, %c0_51] : memref<4x4x32xf32, #tpu.memory_space<vmem>>, vector<1x4x32xf32>
    %66 = vector.shape_cast %65 : vector<1x4x32xf32> to vector<4x32xf32>
    %c1_52 = arith.constant 1 : index
    %c0_53 = arith.constant 0 : index
    %c0_54 = arith.constant 0 : index
    %67 = vector.load %arg9[%c1_52, %c0_53, %c0_54] : memref<4x4x1xf32, #tpu.memory_space<vmem>>, vector<1x4x1xf32>
    %68 = vector.shape_cast %67 : vector<1x4x1xf32> to vector<4x1xf32>
    %c1_55 = arith.constant 1 : index
    %c0_56 = arith.constant 0 : index
    %c0_57 = arith.constant 0 : index
    %69 = vector.load %arg10[%c1_55, %c0_56, %c0_57] : memref<4x4x1xf32, #tpu.memory_space<vmem>>, vector<1x4x1xf32>
    %70 = vector.shape_cast %69 : vector<1x4x1xf32> to vector<4x1xf32>
    %cst_58 = arith.constant dense<0.000000e+00> : vector<4x128xf32>
    %71 = tpu.matmul %66, %64, %cst_58 {dimension_numbers = #tpu.dot_dimension_numbers<[1], [0], [0], [1], [0, 0, 1, 1], [], []>} : vector<4x32xf32>, vector<32x128xf32>, vector<4x128xf32> -> vector<4x128xf32>
    %72 = vector.broadcast %68 : vector<4x1xf32> to vector<4x128xf32>
    %73 = arith.addf %71, %72 : vector<4x128xf32>
    %74 = vector.broadcast %70 : vector<4x1xf32> to vector<4x128xf32>
    %75 = vector.broadcast %1 : vector<1x128xf32> to vector<4x128xf32>
    %76 = arith.mulf %74, %75 : vector<4x128xf32>
    %77 = math.tanh %76 : vector<4x128xf32>
    %78 = arith.mulf %77, %73 : vector<4x128xf32>
    %79 = arith.addf %40, %78 : vector<4x128xf32>
    %c2 = arith.constant 2 : index
    %c0_59 = arith.constant 0 : index
    %c0_60 = arith.constant 0 : index
    %80 = vector.load %arg3[%c2, %c0_59, %c0_60] : memref<4x32x4xf32, #tpu.memory_space<vmem>>, vector<1x32x4xf32>
    %81 = vector.shape_cast %80 : vector<1x32x4xf32> to vector<32x4xf32>
    %c2_61 = arith.constant 2 : index
    %c0_62 = arith.constant 0 : index
    %c0_63 = arith.constant 0 : index
    %82 = vector.load %arg4[%c2_61, %c0_62, %c0_63] : memref<4x32x1xf32, #tpu.memory_space<vmem>>, vector<1x32x1xf32>
    %83 = vector.shape_cast %82 : vector<1x32x1xf32> to vector<32x1xf32>
    %c2_64 = arith.constant 2 : index
    %c0_65 = arith.constant 0 : index
    %c0_66 = arith.constant 0 : index
    %84 = vector.load %arg5[%c2_64, %c0_65, %c0_66] : memref<4x32x1xf32, #tpu.memory_space<vmem>>, vector<1x32x1xf32>
    %85 = vector.shape_cast %84 : vector<1x32x1xf32> to vector<32x1xf32>
    %cst_67 = arith.constant dense<0.000000e+00> : vector<32x128xf32>
    %86 = tpu.matmul %81, %79, %cst_67 {dimension_numbers = #tpu.dot_dimension_numbers<[1], [0], [0], [1], [0, 0, 1, 1], [], []>} : vector<32x4xf32>, vector<4x128xf32>, vector<32x128xf32> -> vector<32x128xf32>
    %87 = vector.broadcast %83 : vector<32x1xf32> to vector<32x128xf32>
    %88 = vector.broadcast %1 : vector<1x128xf32> to vector<32x128xf32>
    %89 = arith.mulf %87, %88 : vector<32x128xf32>
    %90 = arith.addf %86, %89 : vector<32x128xf32>
    %91 = vector.broadcast %85 : vector<32x1xf32> to vector<32x128xf32>
    %92 = arith.addf %90, %91 : vector<32x128xf32>
    %cst_68 = arith.constant 0.000000e+00 : f32
    %93 = vector.broadcast %cst_68 : f32 to vector<32x128xf32>
    %94 = arith.maximumf %92, %93 : vector<32x128xf32>
    %c2_69 = arith.constant 2 : index
    %c0_70 = arith.constant 0 : index
    %c0_71 = arith.constant 0 : index
    %95 = vector.load %arg6[%c2_69, %c0_70, %c0_71] : memref<4x32x32xf32, #tpu.memory_space<vmem>>, vector<1x32x32xf32>
    %96 = vector.shape_cast %95 : vector<1x32x32xf32> to vector<32x32xf32>
    %c2_72 = arith.constant 2 : index
    %c0_73 = arith.constant 0 : index
    %c0_74 = arith.constant 0 : index
    %97 = vector.load %arg7[%c2_72, %c0_73, %c0_74] : memref<4x32x1xf32, #tpu.memory_space<vmem>>, vector<1x32x1xf32>
    %98 = vector.shape_cast %97 : vector<1x32x1xf32> to vector<32x1xf32>
    %cst_75 = arith.constant dense<0.000000e+00> : vector<32x128xf32>
    %99 = tpu.matmul %96, %94, %cst_75 {dimension_numbers = #tpu.dot_dimension_numbers<[1], [0], [0], [1], [0, 0, 1, 1], [], []>} : vector<32x32xf32>, vector<32x128xf32>, vector<32x128xf32> -> vector<32x128xf32>
    %100 = vector.broadcast %98 : vector<32x1xf32> to vector<32x128xf32>
    %101 = arith.addf %99, %100 : vector<32x128xf32>
    %cst_76 = arith.constant 0.000000e+00 : f32
    %102 = vector.broadcast %cst_76 : f32 to vector<32x128xf32>
    %103 = arith.maximumf %101, %102 : vector<32x128xf32>
    %c2_77 = arith.constant 2 : index
    %c0_78 = arith.constant 0 : index
    %c0_79 = arith.constant 0 : index
    %104 = vector.load %arg8[%c2_77, %c0_78, %c0_79] : memref<4x4x32xf32, #tpu.memory_space<vmem>>, vector<1x4x32xf32>
    %105 = vector.shape_cast %104 : vector<1x4x32xf32> to vector<4x32xf32>
    %c2_80 = arith.constant 2 : index
    %c0_81 = arith.constant 0 : index
    %c0_82 = arith.constant 0 : index
    %106 = vector.load %arg9[%c2_80, %c0_81, %c0_82] : memref<4x4x1xf32, #tpu.memory_space<vmem>>, vector<1x4x1xf32>
    %107 = vector.shape_cast %106 : vector<1x4x1xf32> to vector<4x1xf32>
    %c2_83 = arith.constant 2 : index
    %c0_84 = arith.constant 0 : index
    %c0_85 = arith.constant 0 : index
    %108 = vector.load %arg10[%c2_83, %c0_84, %c0_85] : memref<4x4x1xf32, #tpu.memory_space<vmem>>, vector<1x4x1xf32>
    %109 = vector.shape_cast %108 : vector<1x4x1xf32> to vector<4x1xf32>
    %cst_86 = arith.constant dense<0.000000e+00> : vector<4x128xf32>
    %110 = tpu.matmul %105, %103, %cst_86 {dimension_numbers = #tpu.dot_dimension_numbers<[1], [0], [0], [1], [0, 0, 1, 1], [], []>} : vector<4x32xf32>, vector<32x128xf32>, vector<4x128xf32> -> vector<4x128xf32>
    %111 = vector.broadcast %107 : vector<4x1xf32> to vector<4x128xf32>
    %112 = arith.addf %110, %111 : vector<4x128xf32>
    %113 = vector.broadcast %109 : vector<4x1xf32> to vector<4x128xf32>
    %114 = vector.broadcast %1 : vector<1x128xf32> to vector<4x128xf32>
    %115 = arith.mulf %113, %114 : vector<4x128xf32>
    %116 = math.tanh %115 : vector<4x128xf32>
    %117 = arith.mulf %116, %112 : vector<4x128xf32>
    %118 = arith.addf %79, %117 : vector<4x128xf32>
    %c3 = arith.constant 3 : index
    %c0_87 = arith.constant 0 : index
    %c0_88 = arith.constant 0 : index
    %119 = vector.load %arg3[%c3, %c0_87, %c0_88] : memref<4x32x4xf32, #tpu.memory_space<vmem>>, vector<1x32x4xf32>
    %120 = vector.shape_cast %119 : vector<1x32x4xf32> to vector<32x4xf32>
    %c3_89 = arith.constant 3 : index
    %c0_90 = arith.constant 0 : index
    %c0_91 = arith.constant 0 : index
    %121 = vector.load %arg4[%c3_89, %c0_90, %c0_91] : memref<4x32x1xf32, #tpu.memory_space<vmem>>, vector<1x32x1xf32>
    %122 = vector.shape_cast %121 : vector<1x32x1xf32> to vector<32x1xf32>
    %c3_92 = arith.constant 3 : index
    %c0_93 = arith.constant 0 : index
    %c0_94 = arith.constant 0 : index
    %123 = vector.load %arg5[%c3_92, %c0_93, %c0_94] : memref<4x32x1xf32, #tpu.memory_space<vmem>>, vector<1x32x1xf32>
    %124 = vector.shape_cast %123 : vector<1x32x1xf32> to vector<32x1xf32>
    %cst_95 = arith.constant dense<0.000000e+00> : vector<32x128xf32>
    %125 = tpu.matmul %120, %118, %cst_95 {dimension_numbers = #tpu.dot_dimension_numbers<[1], [0], [0], [1], [0, 0, 1, 1], [], []>} : vector<32x4xf32>, vector<4x128xf32>, vector<32x128xf32> -> vector<32x128xf32>
    %126 = vector.broadcast %122 : vector<32x1xf32> to vector<32x128xf32>
    %127 = vector.broadcast %1 : vector<1x128xf32> to vector<32x128xf32>
    %128 = arith.mulf %126, %127 : vector<32x128xf32>
    %129 = arith.addf %125, %128 : vector<32x128xf32>
    %130 = vector.broadcast %124 : vector<32x1xf32> to vector<32x128xf32>
    %131 = arith.addf %129, %130 : vector<32x128xf32>
    %cst_96 = arith.constant 0.000000e+00 : f32
    %132 = vector.broadcast %cst_96 : f32 to vector<32x128xf32>
    %133 = arith.maximumf %131, %132 : vector<32x128xf32>
    %c3_97 = arith.constant 3 : index
    %c0_98 = arith.constant 0 : index
    %c0_99 = arith.constant 0 : index
    %134 = vector.load %arg6[%c3_97, %c0_98, %c0_99] : memref<4x32x32xf32, #tpu.memory_space<vmem>>, vector<1x32x32xf32>
    %135 = vector.shape_cast %134 : vector<1x32x32xf32> to vector<32x32xf32>
    %c3_100 = arith.constant 3 : index
    %c0_101 = arith.constant 0 : index
    %c0_102 = arith.constant 0 : index
    %136 = vector.load %arg7[%c3_100, %c0_101, %c0_102] : memref<4x32x1xf32, #tpu.memory_space<vmem>>, vector<1x32x1xf32>
    %137 = vector.shape_cast %136 : vector<1x32x1xf32> to vector<32x1xf32>
    %cst_103 = arith.constant dense<0.000000e+00> : vector<32x128xf32>
    %138 = tpu.matmul %135, %133, %cst_103 {dimension_numbers = #tpu.dot_dimension_numbers<[1], [0], [0], [1], [0, 0, 1, 1], [], []>} : vector<32x32xf32>, vector<32x128xf32>, vector<32x128xf32> -> vector<32x128xf32>
    %139 = vector.broadcast %137 : vector<32x1xf32> to vector<32x128xf32>
    %140 = arith.addf %138, %139 : vector<32x128xf32>
    %cst_104 = arith.constant 0.000000e+00 : f32
    %141 = vector.broadcast %cst_104 : f32 to vector<32x128xf32>
    %142 = arith.maximumf %140, %141 : vector<32x128xf32>
    %c3_105 = arith.constant 3 : index
    %c0_106 = arith.constant 0 : index
    %c0_107 = arith.constant 0 : index
    %143 = vector.load %arg8[%c3_105, %c0_106, %c0_107] : memref<4x4x32xf32, #tpu.memory_space<vmem>>, vector<1x4x32xf32>
    %144 = vector.shape_cast %143 : vector<1x4x32xf32> to vector<4x32xf32>
    %c3_108 = arith.constant 3 : index
    %c0_109 = arith.constant 0 : index
    %c0_110 = arith.constant 0 : index
    %145 = vector.load %arg9[%c3_108, %c0_109, %c0_110] : memref<4x4x1xf32, #tpu.memory_space<vmem>>, vector<1x4x1xf32>
    %146 = vector.shape_cast %145 : vector<1x4x1xf32> to vector<4x1xf32>
    %c3_111 = arith.constant 3 : index
    %c0_112 = arith.constant 0 : index
    %c0_113 = arith.constant 0 : index
    %147 = vector.load %arg10[%c3_111, %c0_112, %c0_113] : memref<4x4x1xf32, #tpu.memory_space<vmem>>, vector<1x4x1xf32>
    %148 = vector.shape_cast %147 : vector<1x4x1xf32> to vector<4x1xf32>
    %cst_114 = arith.constant dense<0.000000e+00> : vector<4x128xf32>
    %149 = tpu.matmul %144, %142, %cst_114 {dimension_numbers = #tpu.dot_dimension_numbers<[1], [0], [0], [1], [0, 0, 1, 1], [], []>} : vector<4x32xf32>, vector<32x128xf32>, vector<4x128xf32> -> vector<4x128xf32>
    %150 = vector.broadcast %146 : vector<4x1xf32> to vector<4x128xf32>
    %151 = arith.addf %149, %150 : vector<4x128xf32>
    %152 = vector.broadcast %148 : vector<4x1xf32> to vector<4x128xf32>
    %153 = vector.broadcast %1 : vector<1x128xf32> to vector<4x128xf32>
    %154 = arith.mulf %152, %153 : vector<4x128xf32>
    %155 = math.tanh %154 : vector<4x128xf32>
    %156 = arith.mulf %155, %151 : vector<4x128xf32>
    %157 = arith.addf %118, %156 : vector<4x128xf32>
    %c0_115 = arith.constant 0 : index
    %c0_116 = arith.constant 0 : index
    %158 = vector.load %arg11[%c0_115, %c0_116] : memref<4x128xf32, #tpu.memory_space<vmem>>, vector<4x128xf32>
    tpu.vector_store %arg11[%c0_115, %c0_116], %157 {strides = array<i32>} : memref<4x128xf32, #tpu.memory_space<vmem>>, vector<4x128xf32>,
    return
  }
  func.func @transform_0(%arg0: i32) -> (i32, i32) {
    %c0_i32 = arith.constant 0 : i32
    %c0_i32_0 = arith.constant 0 : i32
    return %c0_i32, %arg0 : i32, i32
  }
  func.func @transform_1(%arg0: i32) -> (i32, i32) {
    %c0_i32 = arith.constant 0 : i32
    %c0_i32_0 = arith.constant 0 : i32
    return %c0_i32, %arg0 : i32, i32
  }
  func.func @transform_2(%arg0: i32) -> (i32, i32, i32) {
    %c0_i32 = arith.constant 0 : i32
    %c0_i32_0 = arith.constant 0 : i32
    %c0_i32_1 = arith.constant 0 : i32
    %c0_i32_2 = arith.constant 0 : i32
    return %c0_i32, %c0_i32_0, %c0_i32_1 : i32, i32, i32
  }
  func.func @transform_3(%arg0: i32) -> (i32, i32, i32) {
    %c0_i32 = arith.constant 0 : i32
    %c0_i32_0 = arith.constant 0 : i32
    %c0_i32_1 = arith.constant 0 : i32
    %c0_i32_2 = arith.constant 0 : i32
    return %c0_i32, %c0_i32_0, %c0_i32_1 : i32, i32, i32
  }
  func.func @transform_4(%arg0: i32) -> (i32, i32, i32) {
    %c0_i32 = arith.constant 0 : i32
    %c0_i32_0 = arith.constant 0 : i32
    %c0_i32_1 = arith.constant 0 : i32
    %c0_i32_2 = arith.constant 0 : i32
    return %c0_i32, %c0_i32_0, %c0_i32_1 : i32, i32, i32
  }
  func.func @transform_5(%arg0: i32) -> (i32, i32, i32) {
    %c0_i32 = arith.constant 0 : i32
    %c0_i32_0 = arith.constant 0 : i32
    %c0_i32_1 = arith.constant 0 : i32
    %c0_i32_2 = arith.constant 0 : i32
    return %c0_i32, %c0_i32_0, %c0_i32_1 : i32, i32, i32
  }
  func.func @transform_6(%arg0: i32) -> (i32, i32, i32) {
    %c0_i32 = arith.constant 0 : i32
    %c0_i32_0 = arith.constant 0 : i32
    %c0_i32_1 = arith.constant 0 : i32
    %c0_i32_2 = arith.constant 0 : i32
    return %c0_i32, %c0_i32_0, %c0_i32_1 : i32, i32, i32
  }
  func.func @transform_7(%arg0: i32) -> (i32, i32, i32) {
    %c0_i32 = arith.constant 0 : i32
    %c0_i32_0 = arith.constant 0 : i32
    %c0_i32_1 = arith.constant 0 : i32
    %c0_i32_2 = arith.constant 0 : i32
    return %c0_i32, %c0_i32_0, %c0_i32_1 : i32, i32, i32
  }
  func.func @transform_8(%arg0: i32) -> (i32, i32, i32) {
    %c0_i32 = arith.constant 0 : i32
    %c0_i32_0 = arith.constant 0 : i32
    %c0_i32_1 = arith.constant 0 : i32
    %c0_i32_2 = arith.constant 0 : i32
    return %c0_i32, %c0_i32_0, %c0_i32_1 : i32, i32, i32
  }
  func.func @transform_9(%arg0: i32) -> (i32, i32, i32) {
    %c0_i32 = arith.constant 0 : i32
    %c0_i32_0 = arith.constant 0 : i32
    %c0_i32_1 = arith.constant 0 : i32
    %c0_i32_2 = arith.constant 0 : i32
    return %c0_i32, %c0_i32_0, %c0_i32_1 : i32, i32, i32
  }
  func.func @transform_10(%arg0: i32) -> (i32, i32) {
    %c0_i32 = arith.constant 0 : i32
    %c0_i32_0 = arith.constant 0 : i32
    return %c0_i32, %arg0 : i32, i32
  }
}

</mosaic_0001>

<bundles_post_ra>
// kernel: resnet_flow_forward.1
= control target key start
LH: loop header
LB: loop body
LE: loop exit
PB: predicated region body
PF: predicated region fallthrough
CT: control target
= control target key end

     0   :  { %vm92_vm0 = vcmask 1043456   ;;  %vm79_vm1 = vcmask 31744   ;;  %v1991_v0 = vmov 0   ;;  %vm237_vm2 = vcmask 261120   ;;  %s2437_s3 = inlined_call_operand.vmem [shape: f32[4,32,1], index: 3, kind: input, shape index: {}]   ;;  %s2438_s0 = inlined_call_operand.vmem [shape: f32[4,128], index: 0, kind: input, shape index: {}]   ;;  %s2439_s2 = inlined_call_operand.vmem [shape: f32[4,32,4], index: 2, kind: input, shape index: {}]   ;;  %s2440_s4 = inlined_call_operand.vmem [shape: f32[4,32,1], index: 4, kind: input, shape index: {}]   ;;  %s2441_s6 = inlined_call_operand.vmem [shape: f32[4,32,1], index: 6, kind: input, shape index: {}]   ;;  %s2442_s8 = inlined_call_operand.vmem [shape: f32[4,4,1], index: 8, kind: input, shape index: {}]   ;;  %s2443_s9 = inlined_call_operand.vmem [shape: f32[4,4,1], index: 9, kind: input, shape index: {}]   ;;  %s2444_s5 = inlined_call_operand.vmem [shape: f32[4,32,32], index: 5, kind: input, shape index: {}]   ;;  %s2445_s1 = inlined_call_operand.vmem [shape: f32[1,128], index: 1, kind: input, shape index: {}]   ;;  %s2446_s7 = inlined_call_operand.vmem [shape: f32[4,4,32], index: 7, kind: input, shape index: {}]   ;;  %s2447_s10 = inlined_call_operand.vmem [shape: f32[4,128], index: 10, kind: output, shape index: {}]  }
   0x1   :  { %1982 = vset.pattern.permute.xlu1 %v1991_v0  ;;  %1981 = vset.pattern.permute.xlu0 %v1991_v0  ;;  %v43_v1 = vld [vmem:[%s2437_s3 + $0x10] sm:$0xff]  ;;  %v41_v2 = vld [vmem:[%s2437_s3] sm:$0xff]  ;;  %v38_v5 = vld [vmem:[%s2439_s2 + $0x8] sm:$0xff]  ;;  %vm1993_vm3 = vmmov 0  }
   0x2   :  { %v2059_v3 = vld [vmem:[%s2438_s0] sm:$0xf]  ;;  %61 = vperm.xlu1 %1982, %v43_v1   ;;  %51 = vperm.xlu0 %1981, %v41_v2   ;;  %v44_v6 = vld [vmem:[%s2437_s3 + $0x18] sm:$0xff]  ;;  %v42_v7 = vld [vmem:[%s2437_s3 + $0x8] sm:$0xff] }
   0x3   :  { %v37_v4 = vld [vmem:[%s2439_s2] sm:$0xff]  ;;  %1789 = vmatprep.subr.msk.mxu0 %vm92_vm0, %v2059_v3  ;;  %v39_v8 = vld [vmem:[%s2439_s2 + $0x10] sm:$0xff]  ;;  %v40_v9 = vld [vmem:[%s2439_s2 + $0x18] sm:$0xff] }
   0x4   :  { %1791 = vmatprep.mubr.msk.f32.mxu0 %vm79_vm1, %v37_v4  ;;  %1790 = vmatpush3.msk.msra.mxu0 %vm92_vm0, %v2059_v3  ;;  %v46_v10 = vld [vmem:[%s2440_s4 + $0x8] sm:$0xff]  ;;  %v45_v11 = vld [vmem:[%s2440_s4] sm:$0xff]  ;;  %v48_v12 = vld [vmem:[%s2440_s4 + $0x18] sm:$0xff] }
   0x5   :  { %1792 = vmatmul.mubr.msk.f32.vlgmr.msra.gmra.mrb[0].mxu0 %vm79_vm1, %v38_v5  ;;  %v47_v13 = vld [vmem:[%s2440_s4 + $0x10] sm:$0xff]  ;;  %v214_v14 = vld [vmem:[%s2441_s6 + $0x8] sm:$0xff]  ;;  %v213_v15 = vld [vmem:[%s2441_s6] sm:$0xff] }
   0x6   :  { %66 = vperm.xlu1 %1982, %v44_v6   ;;  %56 = vperm.xlu0 %1981, %v42_v7   ;;  %v216_v16 = vld [vmem:[%s2441_s6 + $0x18] sm:$0xff]  ;;  %v215_v17 = vld [vmem:[%s2441_s6 + $0x10] sm:$0xff]  ;;  %v340_v18 = vld [vmem:[%s2442_s8] sm:$0xf] }
   0x7   :  { %1794 = vmatprep.mubr.msk.f32.mxu0 %vm79_vm1, %v39_v8  ;;  %v341_v19 = vld [vmem:[%s2443_s9] sm:$0xf]  ;;  %v1623_v20 = vld [vmem:[%s2437_s3 + $0x28] sm:$0xff]  ;;  %v1625_v22 = vld [vmem:[%s2437_s3 + $0x38] sm:$0xff] }
   0x8   :  { %v1622_v21 = vld [vmem:[%s2437_s3 + $0x20] sm:$0xff]  ;;  %v1624_v23 = vld [vmem:[%s2437_s3 + $0x30] sm:$0xff]  ;;  %v1627_v24 = vld [vmem:[%s2440_s4 + $0x28] sm:$0xff] }
   0x9   :  { %1795 = vmatmul.mubr.msk.f32.gmra.mrb[2].mxu0 %vm79_vm1, %v40_v9  ;;  %v1626_v25 = vld [vmem:[%s2440_s4 + $0x20] sm:$0xff]  ;;  %v1629_v26 = vld [vmem:[%s2440_s4 + $0x38] sm:$0xff]  ;;  %v1628_v27 = vld [vmem:[%s2440_s4 + $0x30] sm:$0xff] }
   0xa   :  { %188 = vperm.xlu1 %1982, %v46_v10   ;;  %183 = vperm.xlu0 %1981, %v45_v11   ;;  %v1640_v28 = vld [vmem:[%s2441_s6 + $0x28] sm:$0xff]  ;;  %v1639_v29 = vld [vmem:[%s2441_s6 + $0x20] sm:$0xff]  ;;  %v1642_v30 = vld [vmem:[%s2441_s6 + $0x38] sm:$0xff] }
   0xb   :  { %v1641_v31 = vld [vmem:[%s2441_s6 + $0x30] sm:$0xff]  ;;  %v1648_v32 = vld [vmem:[%s2442_s8 + $0x4] sm:$0xf]  ;;  %v1656_v34 = vld [vmem:[%s2437_s3 + $0x48] sm:$0xff] }
   0xc   :  { %v1649_v33 = vld [vmem:[%s2443_s9 + $0x4] sm:$0xf]  ;;  %v1658_v36 = vld [vmem:[%s2437_s3 + $0x58] sm:$0xff]  ;;  %v1657_v37 = vld [vmem:[%s2437_s3 + $0x50] sm:$0xff] }
   0xd   :  { %v1655_v35 = vld [vmem:[%s2437_s3 + $0x40] sm:$0xff]  ;;  %v1660_v38 = vld [vmem:[%s2440_s4 + $0x48] sm:$0xff]  ;;  %v1662_v40 = vld [vmem:[%s2440_s4 + $0x58] sm:$0xff] }
   0xe   :  { %198 = vperm.xlu1 %1982, %v48_v12   ;;  %193 = vperm.xlu0 %1981, %v47_v13   ;;  %v1659_v39 = vld [vmem:[%s2440_s4 + $0x40] sm:$0xff]  ;;  %v1661_v41 = vld [vmem:[%s2440_s4 + $0x50] sm:$0xff]  ;;  %v1673_v42 = vld [vmem:[%s2441_s6 + $0x48] sm:$0xff] }
   0xf   :  { %v1672_v43 = vld [vmem:[%s2441_s6 + $0x40] sm:$0xff]  ;;  %v1675_v44 = vld [vmem:[%s2441_s6 + $0x58] sm:$0xff]  ;;  %v1674_v45 = vld [vmem:[%s2441_s6 + $0x50] sm:$0xff] }
  0x10   :  { %v1681_v46 = vld [vmem:[%s2442_s8 + $0x8] sm:$0xf]  ;;  %v1688_v49 = vld [vmem:[%s2437_s3 + $0x60] sm:$0xff]  ;;  %v1691_v50 = vld [vmem:[%s2437_s3 + $0x78] sm:$0xff] }
  0x11   :  { %v1682_v47 = vld [vmem:[%s2443_s9 + $0x8] sm:$0xf]  ;;  %v1690_v51 = vld [vmem:[%s2437_s3 + $0x70] sm:$0xff]  ;;  %v1692_v53 = vld [vmem:[%s2440_s4 + $0x60] sm:$0xff] }
  0x12   :  { %224 = vperm.xlu1 %1982, %v214_v14   ;;  %219 = vperm.xlu0 %1981, %v213_v15   ;;  %v1689_v48 = vld [vmem:[%s2437_s3 + $0x68] sm:$0xff]  ;;  %v1695_v54 = vld [vmem:[%s2440_s4 + $0x78] sm:$0xff]  ;;  %v1694_v55 = vld [vmem:[%s2440_s4 + $0x70] sm:$0xff] }
  0x13   :  { %v1693_v52 = vld [vmem:[%s2440_s4 + $0x68] sm:$0xff]  ;;  %v1705_v57 = vld [vmem:[%s2441_s6 + $0x60] sm:$0xff]  ;;  %v1708_v58 = vld [vmem:[%s2441_s6 + $0x78] sm:$0xff] }
  0x14   :  { %v1706_v56 = vld [vmem:[%s2441_s6 + $0x68] sm:$0xff]  ;;  %v1707_v59 = vld [vmem:[%s2441_s6 + $0x70] sm:$0xff]  ;;  %v209_v60 = vld [vmem:[%s2444_s5] sm:$0xff] }
  0x15   :  { %1805 = vmatprep.mubr.msk.f32.mxu1 %vm237_vm2, %v209_v60  ;;  %v1714_v61 = vld [vmem:[%s2442_s8 + $0xc] sm:$0xf]  ;;  %v2250_v4 = vld [vmem:[%s2445_s1] ss:$0 sm:$0xff] }
  0x16   :  { %234 = vperm.xlu1 %1982, %v216_v16   ;;  %229 = vperm.xlu0 %1981, %v215_v17   ;;  %v1715_v62 = vld [vmem:[%s2443_s9 + $0xc] sm:$0xf] }
  0x1a   :  { %344 = vperm.xlu1 %1982, %v340_v18   ;;  %422 = vperm.xlu0 %1981, %v341_v19  }
  0x1e   :  { %451 = vperm.xlu1 %1982, %v1623_v20   ;;  %446 = vperm.xlu0 %1981, %v1622_v21  }
  0x22   :  { %461 = vperm.xlu1 %1982, %v1625_v22   ;;  %456 = vperm.xlu0 %1981, %v1624_v23  }
  0x26   :  { %575 = vperm.xlu1 %1982, %v1627_v24   ;;  %570 = vperm.xlu0 %1981, %v1626_v25  }
  0x2a   :  { %585 = vperm.xlu1 %1982, %v1629_v26   ;;  %580 = vperm.xlu0 %1981, %v1628_v27  }
  0x2e   :  { %613 = vperm.xlu1 %1982, %v1640_v28   ;;  %608 = vperm.xlu0 %1981, %v1639_v29  }
  0x32   :  { %623 = vperm.xlu1 %1982, %v1642_v30   ;;  %618 = vperm.xlu0 %1981, %v1641_v31   ;;  %v210_v31 = vld [vmem:[%s2444_s5 + $0x8] sm:$0xff] }
  0x36   :  { %735 = vperm.xlu1 %1982, %v1648_v32   ;;  %813 = vperm.xlu0 %1981, %v1649_v33   ;;  %v211_v32 = vld [vmem:[%s2444_s5 + $0x10] sm:$0xff]  ;;  %v212_v33 = vld [vmem:[%s2444_s5 + $0x18] sm:$0xff] }
  0x3a   :  { %842 = vperm.xlu1 %1982, %v1656_v34   ;;  %837 = vperm.xlu0 %1981, %v1655_v35   ;;  %v1992_v34 = vmov 0.0|0.0   ;;  %v1994_v35 = vmov 0.0  }
  0x3b   :  { %1929 = vmatprep.subr.bf16.mxu0 %v1992_v34  ;;  %1819 = vmatprep.mubr.msk.f32.mxu0 %vm1993_vm3, %v1994_v35 }
  0x3e   :  { %852 = vperm.xlu1 %1982, %v1658_v36   ;;  %847 = vperm.xlu0 %1981, %v1657_v37  }
  0x42   :  { %966 = vperm.xlu1 %1982, %v1660_v38   ;;  %961 = vperm.xlu0 %1981, %v1659_v39  }
  0x46   :  { %976 = vperm.xlu1 %1982, %v1662_v40   ;;  %971 = vperm.xlu0 %1981, %v1661_v41  }
  0x4a   :  { %1004 = vperm.xlu1 %1982, %v1673_v42   ;;  %999 = vperm.xlu0 %1981, %v1672_v43  }
  0x4e   :  { %1014 = vperm.xlu1 %1982, %v1675_v44   ;;  %1009 = vperm.xlu0 %1981, %v1674_v45  }
  0x52   :  { %1126 = vperm.xlu1 %1982, %v1681_v46   ;;  %1204 = vperm.xlu0 %1981, %v1682_v47  }
  0x56   :  { %1233 = vperm.xlu1 %1982, %v1689_v48   ;;  %1228 = vperm.xlu0 %1981, %v1688_v49  }
  0x5a   :  { %1243 = vperm.xlu1 %1982, %v1691_v50   ;;  %1238 = vperm.xlu0 %1981, %v1690_v51  }
  0x5e   :  { %1357 = vperm.xlu1 %1982, %v1693_v52   ;;  %1352 = vperm.xlu0 %1981, %v1692_v53  }
  0x62   :  { %1367 = vperm.xlu1 %1982, %v1695_v54   ;;  %1362 = vperm.xlu0 %1981, %v1694_v55   ;;  %v339_v54 = vld [vmem:[%s2446_s7] sm:$0xf] }
  0x63   :  { %v1618_v55 = vld [vmem:[%s2439_s2 + $0x20] sm:$0xff] }
  0x66   :  { %1395 = vperm.xlu1 %1982, %v1706_v56   ;;  %1390 = vperm.xlu0 %1981, %v1705_v57  }
  0x6a   :  { %1405 = vperm.xlu1 %1982, %v1708_v58   ;;  %1400 = vperm.xlu0 %1981, %v1707_v59  }
  0x6e   :  { %1517 = vperm.xlu1 %1982, %v1714_v61   ;;  %1595 = vperm.xlu0 %1981, %v1715_v62  }
  0x81   :  { %v62_v63 = vpop.permute.xlu1 %61  ;;  %v52_v0 = vpop.permute.xlu0 %51 }
  0x82   :  { %v75_v6 = vmul.f32 %v2250_v4, %v52_v0  ;;  %v77_v15 = vmul.f32 %v2250_v4, %v62_v63 }
  0x85   :  { %v67_v1 = vpop.permute.xlu1 %66  ;;  %v57_v2 = vpop.permute.xlu0 %56 }
  0x86   :  { %v76_v5 = vmul.f32 %v2250_v4, %v57_v2  ;;  %v78_v13 = vmul.f32 %v2250_v4, %v67_v1  ;;  %v1619_v1 = vld [vmem:[%s2439_s2 + $0x28] sm:$0xff]  ;;  %v1620_v2 = vld [vmem:[%s2439_s2 + $0x30] sm:$0xff] }
  0x89   :  { %v189_v7 = vpop.permute.xlu1 %188  ;;  %v184_v9 = vpop.permute.xlu0 %183 }
  0x8d   :  { %v199_v21 = vpop.permute.xlu1 %198  ;;  %v194_v24 = vpop.permute.xlu0 %193 }
  0x91   :  { %v225_v36 = vpop.permute.xlu1 %224  ;;  %v220_v37 = vpop.permute.xlu0 %219 }
  0x95   :  { %v235_v43 = vpop.permute.xlu1 %234  ;;  %v230_v46 = vpop.permute.xlu0 %229 }
  0x99   :  { %v423_v56 = vpop.permute.xlu0 %422  ;;  %v345_v58 = vpop.permute.xlu1 %344 }
  0x9a   :  { %v425_v57 = vmul.f32 %v2250_v4, %v423_v56 }
  0x9c   :  { %1983 = vtanh.f32 %v425_v57 }
  0xa6   :  { %v1984_v62 = vpop.eup %1983 }
  0xd8   :  { %v1793_v8 = vpop.f32.mrb[0].mxu0 }
  0xd9   :  { %v168_v10 = vadd.f32 %v1793_v8, %v76_v5  ;;  %v162_v11 = vpop.f32.mrb[1].mxu0  ;;  %v1635_v5 = vld [vmem:[%s2444_s5 + $0x20] sm:$0xff] }
  0xda   :  { %v163_v12 = vadd.f32 %v162_v11, %v75_v6  ;;  %v452_v6 = vpop.permute.xlu1 %451 }
  0xdb   :  { %v202_v14 = vadd.f32 %v189_v7, %v168_v10  ;;  %v447_v7 = vpop.permute.xlu0 %446  ;;  %v465_v10 = vmul.f32 %v2250_v4, %v452_v6 }
  0xdc   :  { %v201_v16 = vadd.f32 %v184_v9, %v163_v12  ;;  %v1796_v17 = vpop.f32.mrb[2].mxu0  ;;  %v464_v11 = vmul.f32 %v2250_v4, %v447_v7 }
  0xdd   :  { %v206_v18 = vmax.f32 %v202_v14, 0.0  ;;  %v178_v19 = vadd.f32 %v1796_v17, %v78_v13  ;;  %v172_v20 = vpop.f32.mrb[3].mxu0 }
  0xde   :  { %v205_v22 = vmax.f32 %v201_v16, 0.0  ;;  %v173_v23 = vadd.f32 %v172_v20, %v77_v15  ;;  %v462_v8 = vpop.permute.xlu1 %461 }
  0xdf   :  { %v204_v25 = vadd.f32 %v199_v21, %v178_v19  ;;  %v457_v9 = vpop.permute.xlu0 %456 }
  0xe0   :  { %v203_v26 = vadd.f32 %v194_v24, %v173_v23  ;;  %v1921_v27 = vpack.c.bf16 %v206_v18, %v205_v22  ;;  %v467_v18 = vmul.f32 %v2250_v4, %v462_v8  ;;  %v466_v20 = vmul.f32 %v2250_v4, %v457_v9  ;;  %v1652_v8 = vld [vmem:[%s2439_s2 + $0x48] sm:$0xff]  ;;  %v1653_v9 = vld [vmem:[%s2439_s2 + $0x50] sm:$0xff] }
  0xe1   :  { %v208_v28 = vmax.f32 %v204_v25, 0.0 }
  0xe2   :  { %v207_v29 = vmax.f32 %v203_v26, 0.0  ;;  %1922 = vmatprep.subr.bf16.mxu1 %v1921_v27  ;;  %v576_v12 = vpop.permute.xlu1 %575 }
  0xe3   :  { %1924 = vmatpush3.bf16.msra.mxu1 %v1921_v27  ;;  %v571_v14 = vpop.permute.xlu0 %570 }
  0xe4   :  { %v1925_v30 = vpack.c.bf16 %v208_v28, %v207_v29 }
  0xe6   :  { %1926 = vmatprep.subr.bf16.mxu1 %v1925_v30  ;;  %v586_v26 = vpop.permute.xlu1 %585 }
  0xe7   :  { %1928 = vmatpush3.bf16.msra.mxu1 %v1925_v30  ;;  %v581_v29 = vpop.permute.xlu0 %580 }
  0xea   :  { %1806 = vmatmul.mubr.msk.f32.vlgmr.msra.gmra.mrb[0].mxu1 %vm237_vm2, %v210_v31 }
  0xeb   :  { %1808 = vmatprep.mubr.msk.f32.mxu1 %vm237_vm2, %v211_v32 }
  0xee   :  { %1809 = vmatmul.mubr.msk.f32.gmra.mrb[2].mxu1 %vm237_vm2, %v212_v33 }
  0xef   :  { %1838 = vmatprep.mubr.msk.f32.mxu1 %vm237_vm2, %v1635_v5 }
 0x1bd   :  { %v1807_v38 = vpop.f32.mrb[0].mxu1 }
 0x1be   :  { %v322_v39 = vadd.f32 %v1807_v38, %v225_v36  ;;  %v316_v40 = vpop.f32.mrb[1].mxu1  ;;  %v1636_v38 = vld [vmem:[%s2444_s5 + $0x28] sm:$0xff] }
 0x1bf   :  { %v317_v41 = vadd.f32 %v316_v40, %v220_v37  ;;  %v1638_v40 = vld [vmem:[%s2444_s5 + $0x38] sm:$0xff] }
 0x1c0   :  { %v336_v42 = vmax.f32 %v322_v39, 0.0  ;;  %v1637_v39 = vld [vmem:[%s2444_s5 + $0x30] sm:$0xff] }
 0x1c1   :  { %v335_v44 = vmax.f32 %v317_v41, 0.0  ;;  %v1810_v45 = vpop.f32.mrb[2].mxu1  ;;  %v614_v41 = vpop.permute.xlu1 %613 }
 0x1c2   :  { %v332_v47 = vadd.f32 %v1810_v45, %v235_v43  ;;  %v326_v48 = vpop.f32.mrb[3].mxu1 }
 0x1c3   :  { %v1930_v49 = vpack.c.bf16 %v336_v42, %v335_v44  ;;  %v327_v50 = vadd.f32 %v326_v48, %v230_v46  ;;  %v609_v42 = vpop.permute.xlu0 %608 }
 0x1c4   :  { %v338_v51 = vmax.f32 %v332_v47, 0.0 }
 0x1c5   :  { %v337_v52 = vmax.f32 %v327_v50, 0.0  ;;  %1931 = vmatpush3.bf16.msra.mxu0 %v1930_v49  ;;  %v624_v48 = vpop.permute.xlu1 %623 }
 0x1c6   :  { %1932 = vmatprep.subr.bf16.mxu0 %v1992_v34 }
 0x1c7   :  { %v1933_v53 = vpack.c.bf16 %v338_v51, %v337_v52  ;;  %v619_v51 = vpop.permute.xlu0 %618 }
 0x1c9   :  { %1934 = vmatpush3.bf16.msra.mxu0 %v1933_v53 }
 0x1cc   :  { %1820 = vmatmul.mubr.msk.f32.vlgmr.msra.gmra.mrb[4].mxu0 %vm237_vm2, %v339_v54 }
 0x1cd   :  { %1824 = vmatprep.mubr.msk.f32.mxu0 %vm79_vm1, %v1618_v55 }
 0x29f   :  { %v416_v59 = vpop.f32.mrb[4].mxu0 }
 0x2a0   :  { %v417_v60 = vadd.f32 %v416_v59, %v345_v58  ;;  %v1821_v61 = vpop.f32.mrb[5].mxu0  ;;  %v1647_v59 = vld [vmem:[%s2446_s7 + $0x4] sm:$0xf] }
 0x2a1   :  { %v814_v61 = vpop.permute.xlu0 %813 }
 0x2a2   :  { %v427_v63 = vmul.f32 %v1984_v62, %v417_v60  ;;  %v1651_v60 = vld [vmem:[%s2439_s2 + $0x40] sm:$0xff]  ;;  %v816_v62 = vmul.f32 %v2250_v4, %v814_v61 }
 0x2a4   :  { %v2282_v0 = vadd.f32 %v427_v63, %v2059_v3  ;;  %v1621_v3 = vld [vmem:[%s2439_s2 + $0x38] sm:$0xff]  ;;  %1985 = vtanh.f32 %v816_v62  ;;  %v736_v63 = vpop.permute.xlu1 %735 }
 0x2a6   :  { %1822 = vmatprep.subr.msk.mxu0 %vm92_vm0, %v2282_v0 }
 0x2a7   :  { %1823 = vmatpush3.msk.msra.mxu0 %vm92_vm0, %v2282_v0 }
 0x2a8   :  { %1825 = vmatmul.mubr.msk.f32.vlgmr.msra.gmra.mrb[6].mxu0 %vm79_vm1, %v1619_v1  ;;  %1943 = vmatprep.subr.bf16.mxu0 %v1992_v34 }
 0x2a9   :  { %1827 = vmatprep.mubr.msk.f32.mxu0 %vm79_vm1, %v1620_v2 }
 0x2ac   :  { %1828 = vmatmul.mubr.msk.f32.gmra.mrb[8].mxu0 %vm79_vm1, %v1621_v3 }
 0x2ad   :  { %1852 = vmatprep.mubr.msk.f32.mxu0 %vm1993_vm3, %v1994_v35 }
 0x2ae   :  { %v1986_v5 = vpop.eup %1985 }
 0x37b   :  { %v1826_v13 = vpop.f32.mrb[6].mxu0 }
 0x37c   :  { %v555_v15 = vadd.f32 %v1826_v13, %v465_v10  ;;  %v549_v16 = vpop.f32.mrb[7].mxu0  ;;  %v1668_v10 = vld [vmem:[%s2444_s5 + $0x40] sm:$0xff] }
 0x37d   :  { %v550_v17 = vadd.f32 %v549_v16, %v464_v11  ;;  %v843_v11 = vpop.permute.xlu1 %842 }
 0x37e   :  { %v589_v19 = vadd.f32 %v576_v12, %v555_v15  ;;  %v838_v12 = vpop.permute.xlu0 %837  ;;  %v856_v15 = vmul.f32 %v2250_v4, %v843_v11 }
 0x37f   :  { %v588_v21 = vadd.f32 %v571_v14, %v550_v17  ;;  %v1829_v22 = vpop.f32.mrb[8].mxu0  ;;  %v855_v16 = vmul.f32 %v2250_v4, %v838_v12 }
 0x380   :  { %v593_v23 = vmax.f32 %v589_v19, 0.0  ;;  %v565_v24 = vadd.f32 %v1829_v22, %v467_v18  ;;  %v559_v25 = vpop.f32.mrb[9].mxu0 }
 0x381   :  { %v592_v27 = vmax.f32 %v588_v21, 0.0  ;;  %v560_v28 = vadd.f32 %v559_v25, %v466_v20  ;;  %v853_v13 = vpop.permute.xlu1 %852 }
 0x382   :  { %v591_v30 = vadd.f32 %v586_v26, %v565_v24  ;;  %v848_v14 = vpop.permute.xlu0 %847 }
 0x383   :  { %v590_v31 = vadd.f32 %v581_v29, %v560_v28  ;;  %v1935_v32 = vpack.c.bf16 %v593_v23, %v592_v27  ;;  %v858_v23 = vmul.f32 %v2250_v4, %v853_v13  ;;  %v857_v25 = vmul.f32 %v2250_v4, %v848_v14  ;;  %v1685_v13 = vld [vmem:[%s2439_s2 + $0x68] sm:$0xff]  ;;  %v1686_v14 = vld [vmem:[%s2439_s2 + $0x70] sm:$0xff] }
 0x384   :  { %v595_v33 = vmax.f32 %v591_v30, 0.0 }
 0x385   :  { %v594_v36 = vmax.f32 %v590_v31, 0.0  ;;  %1936 = vmatprep.subr.bf16.mxu1 %v1935_v32  ;;  %v967_v17 = vpop.permute.xlu1 %966 }
 0x386   :  { %1938 = vmatpush3.bf16.msra.mxu1 %v1935_v32  ;;  %v962_v19 = vpop.permute.xlu0 %961 }
 0x387   :  { %v1939_v37 = vpack.c.bf16 %v595_v33, %v594_v36 }
 0x389   :  { %1940 = vmatprep.subr.bf16.mxu1 %v1939_v37  ;;  %v977_v31 = vpop.permute.xlu1 %976 }
 0x38a   :  { %1942 = vmatpush3.bf16.msra.mxu1 %v1939_v37  ;;  %v972_v36 = vpop.permute.xlu0 %971 }
 0x38d   :  { %1839 = vmatmul.mubr.msk.f32.vlgmr.msra.gmra.mrb[4].mxu1 %vm237_vm2, %v1636_v38 }
 0x38e   :  { %1841 = vmatprep.mubr.msk.f32.mxu1 %vm237_vm2, %v1637_v39 }
 0x391   :  { %1842 = vmatmul.mubr.msk.f32.gmra.mrb[6].mxu1 %vm237_vm2, %v1638_v40 }
 0x392   :  { %1857 = vmatprep.mubr.msk.f32.mxu1 %vm79_vm1, %v1651_v60 }
 0x460   :  { %v1840_v43 = vpop.f32.mrb[4].mxu1 }
 0x461   :  { %v710_v44 = vadd.f32 %v1840_v43, %v614_v41  ;;  %v704_v45 = vpop.f32.mrb[5].mxu1  ;;  %v1669_v43 = vld [vmem:[%s2444_s5 + $0x48] sm:$0xff] }
 0x462   :  { %v705_v46 = vadd.f32 %v704_v45, %v609_v42  ;;  %v1671_v45 = vld [vmem:[%s2444_s5 + $0x58] sm:$0xff] }
 0x463   :  { %v724_v47 = vmax.f32 %v710_v44, 0.0  ;;  %v1670_v44 = vld [vmem:[%s2444_s5 + $0x50] sm:$0xff] }
 0x464   :  { %v723_v49 = vmax.f32 %v705_v46, 0.0  ;;  %v1843_v50 = vpop.f32.mrb[6].mxu1  ;;  %v1005_v46 = vpop.permute.xlu1 %1004 }
 0x465   :  { %v720_v52 = vadd.f32 %v1843_v50, %v624_v48  ;;  %v714_v53 = vpop.f32.mrb[7].mxu1 }
 0x466   :  { %v1944_v54 = vpack.c.bf16 %v724_v47, %v723_v49  ;;  %v715_v55 = vadd.f32 %v714_v53, %v619_v51  ;;  %v1000_v47 = vpop.permute.xlu0 %999 }
 0x467   :  { %v726_v56 = vmax.f32 %v720_v52, 0.0 }
 0x468   :  { %v725_v57 = vmax.f32 %v715_v55, 0.0  ;;  %1945 = vmatpush3.bf16.msra.mxu0 %v1944_v54  ;;  %v1015_v53 = vpop.permute.xlu1 %1014 }
 0x469   :  { %1946 = vmatprep.subr.bf16.mxu0 %v1992_v34 }
 0x46a   :  { %v1947_v58 = vpack.c.bf16 %v726_v56, %v725_v57  ;;  %v1010_v56 = vpop.permute.xlu0 %1009 }
 0x46c   :  { %1948 = vmatpush3.bf16.msra.mxu0 %v1947_v58 }
 0x46f   :  { %1853 = vmatmul.mubr.msk.f32.vlgmr.msra.gmra.mrb[10].mxu0 %vm237_vm2, %v1647_v59 }
 0x470   :  { %1871 = vmatprep.mubr.msk.f32.mxu0 %vm237_vm2, %v1668_v10 }
 0x542   :  { %v807_v1 = vpop.f32.mrb[10].mxu0 }
 0x543   :  { %v808_v2 = vadd.f32 %v807_v1, %v736_v63  ;;  %v1854_v3 = vpop.f32.mrb[11].mxu0  ;;  %v1680_v1 = vld [vmem:[%s2446_s7 + $0x8] sm:$0xf] }
 0x544   :  { %v1205_v3 = vpop.permute.xlu0 %1204 }
 0x545   :  { %v818_v6 = vmul.f32 %v1986_v5, %v808_v2  ;;  %v1684_v2 = vld [vmem:[%s2439_s2 + $0x60] sm:$0xff]  ;;  %v1207_v5 = vmul.f32 %v2250_v4, %v1205_v3 }
 0x547   :  { %v2334_v7 = vadd.f32 %v818_v6, %v2282_v0  ;;  %v1654_v0 = vld [vmem:[%s2439_s2 + $0x58] sm:$0xff]  ;;  %1987 = vtanh.f32 %v1207_v5  ;;  %v1127_v6 = vpop.permute.xlu1 %1126 }
 0x549   :  { %1855 = vmatprep.subr.msk.mxu1 %vm92_vm0, %v2334_v7 }
 0x54a   :  { %1856 = vmatpush3.msk.msra.mxu1 %vm92_vm0, %v2334_v7 }
 0x54b   :  { %1858 = vmatmul.mubr.msk.f32.vlgmr.msra.gmra.mrb[8].mxu1 %vm79_vm1, %v1652_v8  ;;  %1957 = vmatprep.subr.bf16.mxu1 %v1992_v34 }
 0x54c   :  { %1860 = vmatprep.mubr.msk.f32.mxu1 %vm79_vm1, %v1653_v9 }
 0x54f   :  { %1861 = vmatmul.mubr.msk.f32.gmra.mrb[10].mxu1 %vm79_vm1, %v1654_v0 }
 0x550   :  { %1885 = vmatprep.mubr.msk.f32.mxu1 %vm1993_vm3, %v1994_v35 }
 0x551   :  { %v1988_v10 = vpop.eup %1987 }
 0x61e   :  { %v1859_v18 = vpop.f32.mrb[8].mxu1 }
 0x61f   :  { %v946_v20 = vadd.f32 %v1859_v18, %v856_v15  ;;  %v940_v21 = vpop.f32.mrb[9].mxu1  ;;  %v1701_v15 = vld [vmem:[%s2444_s5 + $0x60] sm:$0xff] }
 0x620   :  { %v941_v22 = vadd.f32 %v940_v21, %v855_v16  ;;  %v1234_v16 = vpop.permute.xlu1 %1233 }
 0x621   :  { %v980_v24 = vadd.f32 %v967_v17, %v946_v20  ;;  %v1229_v17 = vpop.permute.xlu0 %1228  ;;  %v1247_v20 = vmul.f32 %v2250_v4, %v1234_v16 }
 0x622   :  { %v979_v26 = vadd.f32 %v962_v19, %v941_v22  ;;  %v1862_v27 = vpop.f32.mrb[10].mxu1  ;;  %v1246_v21 = vmul.f32 %v2250_v4, %v1229_v17 }
 0x623   :  { %v984_v28 = vmax.f32 %v980_v24, 0.0  ;;  %v956_v29 = vadd.f32 %v1862_v27, %v858_v23  ;;  %v950_v30 = vpop.f32.mrb[11].mxu1 }
 0x624   :  { %v983_v32 = vmax.f32 %v979_v26, 0.0  ;;  %v951_v33 = vadd.f32 %v950_v30, %v857_v25  ;;  %v1244_v18 = vpop.permute.xlu1 %1243 }
 0x625   :  { %v982_v37 = vadd.f32 %v977_v31, %v956_v29  ;;  %v1239_v19 = vpop.permute.xlu0 %1238  ;;  %v1249_v27 = vmul.f32 %v2250_v4, %v1244_v18 }
 0x626   :  { %v981_v38 = vadd.f32 %v972_v36, %v951_v33  ;;  %v1949_v39 = vpack.c.bf16 %v984_v28, %v983_v32  ;;  %v1248_v29 = vmul.f32 %v2250_v4, %v1239_v19 }
 0x627   :  { %v986_v40 = vmax.f32 %v982_v37, 0.0 }
 0x628   :  { %v985_v41 = vmax.f32 %v981_v38, 0.0  ;;  %1950 = vmatprep.subr.bf16.mxu0 %v1949_v39  ;;  %v1358_v22 = vpop.permute.xlu1 %1357 }
 0x629   :  { %1952 = vmatpush3.bf16.msra.mxu0 %v1949_v39  ;;  %v1353_v24 = vpop.permute.xlu0 %1352 }
 0x62a   :  { %v1953_v42 = vpack.c.bf16 %v986_v40, %v985_v41 }
 0x62c   :  { %1954 = vmatprep.subr.bf16.mxu0 %v1953_v42  ;;  %v1368_v37 = vpop.permute.xlu1 %1367 }
 0x62d   :  { %1956 = vmatpush3.bf16.msra.mxu0 %v1953_v42  ;;  %v1363_v40 = vpop.permute.xlu0 %1362 }
 0x630   :  { %1872 = vmatmul.mubr.msk.f32.vlgmr.msra.gmra.mrb[12].mxu0 %vm237_vm2, %v1669_v43 }
 0x631   :  { %1874 = vmatprep.mubr.msk.f32.mxu0 %vm237_vm2, %v1670_v44 }
 0x634   :  { %1875 = vmatmul.mubr.msk.f32.gmra.mrb[14].mxu0 %vm237_vm2, %v1671_v45 }
 0x635   :  { %1904 = vmatprep.mubr.msk.f32.mxu0 %vm237_vm2, %v1701_v15 }
 0x703   :  { %v1873_v48 = vpop.f32.mrb[12].mxu0 }
 0x704   :  { %v1101_v49 = vadd.f32 %v1873_v48, %v1005_v46  ;;  %v1095_v50 = vpop.f32.mrb[13].mxu0  ;;  %v1703_v48 = vld [vmem:[%s2444_s5 + $0x70] sm:$0xff] }
 0x705   :  { %v1096_v51 = vadd.f32 %v1095_v50, %v1000_v47  ;;  %v1702_v47 = vld [vmem:[%s2444_s5 + $0x68] sm:$0xff]  ;;  %v1396_v50 = vpop.permute.xlu1 %1395 }
 0x706   :  { %v1115_v52 = vmax.f32 %v1101_v49, 0.0  ;;  %v1704_v49 = vld [vmem:[%s2444_s5 + $0x78] sm:$0xff] }
 0x707   :  { %v1114_v54 = vmax.f32 %v1096_v51, 0.0  ;;  %v1876_v55 = vpop.f32.mrb[14].mxu0  ;;  %v1391_v51 = vpop.permute.xlu0 %1390 }
 0x708   :  { %v1111_v57 = vadd.f32 %v1876_v55, %v1015_v53  ;;  %v1105_v58 = vpop.f32.mrb[15].mxu0 }
 0x709   :  { %v1958_v59 = vpack.c.bf16 %v1115_v52, %v1114_v54  ;;  %v1106_v60 = vadd.f32 %v1105_v58, %v1010_v56 }
 0x70a   :  { %v1117_v61 = vmax.f32 %v1111_v57, 0.0  ;;  %v1406_v57 = vpop.permute.xlu1 %1405 }
 0x70b   :  { %v1116_v62 = vmax.f32 %v1106_v60, 0.0  ;;  %1959 = vmatpush3.bf16.msra.mxu1 %v1958_v59  ;;  %v1401_v60 = vpop.permute.xlu0 %1400 }
 0x70c   :  { %1960 = vmatprep.subr.bf16.mxu1 %v1992_v34 }
 0x70d   :  { %v1961_v63 = vpack.c.bf16 %v1117_v61, %v1116_v62 }
 0x70f   :  { %1962 = vmatpush3.bf16.msra.mxu1 %v1961_v63 }
 0x712   :  { %1886 = vmatmul.mubr.msk.f32.vlgmr.msra.gmra.mrb[12].mxu1 %vm237_vm2, %v1680_v1 }
 0x713   :  { %1890 = vmatprep.mubr.msk.f32.mxu1 %vm79_vm1, %v1684_v2 }
 0x7e5   :  { %v1198_v8 = vpop.f32.mrb[12].mxu1 }
 0x7e6   :  { %v1199_v9 = vadd.f32 %v1198_v8, %v1127_v6  ;;  %v1887_v0 = vpop.f32.mrb[13].mxu1  ;;  %v1713_v6 = vld [vmem:[%s2446_s7 + $0xc] sm:$0xf]  ;;  %v1596_v8 = vpop.permute.xlu0 %1595 }
 0x7e7   :  { %v1518_v0 = vpop.permute.xlu1 %1517 }
 0x7e8   :  { %v1209_v11 = vmul.f32 %v1988_v10, %v1199_v9  ;;  %v1598_v9 = vmul.f32 %v2250_v4, %v1596_v8 }
 0x7ea   :  { %v2386_v12 = vadd.f32 %v1209_v11, %v2334_v7  ;;  %v1687_v7 = vld [vmem:[%s2439_s2 + $0x78] sm:$0xff]  ;;  %1989 = vtanh.f32 %v1598_v9 }
 0x7ec   :  { %1888 = vmatprep.subr.msk.mxu1 %vm92_vm0, %v2386_v12 }
 0x7ed   :  { %1889 = vmatpush3.msk.msra.mxu1 %vm92_vm0, %v2386_v12 }
 0x7ee   :  { %1891 = vmatmul.mubr.msk.f32.vlgmr.msra.gmra.mrb[14].mxu1 %vm79_vm1, %v1685_v13  ;;  %1971 = vmatprep.subr.bf16.mxu1 %v1992_v34 }
 0x7ef   :  { %1893 = vmatprep.mubr.msk.f32.mxu1 %vm79_vm1, %v1686_v14 }
 0x7f2   :  { %1894 = vmatmul.mubr.msk.f32.gmra.mrb[16].mxu1 %vm79_vm1, %v1687_v7 }
 0x7f3   :  { %1918 = vmatprep.mubr.msk.f32.mxu1 %vm1993_vm3, %v1994_v35 }
 0x7f4   :  { %v1990_v14 = vpop.eup %1989 }
 0x8c1   :  { %v1892_v23 = vpop.f32.mrb[14].mxu1 }
 0x8c2   :  { %v1337_v25 = vadd.f32 %v1892_v23, %v1247_v20  ;;  %v1331_v26 = vpop.f32.mrb[15].mxu1 }
 0x8c3   :  { %v1332_v35 = vadd.f32 %v1331_v26, %v1246_v21 }
 0x8c4   :  { %v1371_v28 = vadd.f32 %v1358_v22, %v1337_v25 }
 0x8c5   :  { %v1370_v30 = vadd.f32 %v1353_v24, %v1332_v35  ;;  %v1895_v31 = vpop.f32.mrb[16].mxu1 }
 0x8c6   :  { %v1375_v32 = vmax.f32 %v1371_v28, 0.0  ;;  %v1347_v33 = vadd.f32 %v1895_v31, %v1249_v27  ;;  %v1341_v36 = vpop.f32.mrb[17].mxu1 }
 0x8c7   :  { %v1374_v38 = vmax.f32 %v1370_v30, 0.0  ;;  %v1342_v39 = vadd.f32 %v1341_v36, %v1248_v29 }
 0x8c8   :  { %v1373_v41 = vadd.f32 %v1368_v37, %v1347_v33 }
 0x8c9   :  { %v1372_v42 = vadd.f32 %v1363_v40, %v1342_v39  ;;  %v1963_v43 = vpack.c.bf16 %v1375_v32, %v1374_v38 }
 0x8ca   :  { %v1377_v44 = vmax.f32 %v1373_v41, 0.0 }
 0x8cb   :  { %v1376_v45 = vmax.f32 %v1372_v42, 0.0  ;;  %1964 = vmatprep.subr.bf16.mxu0 %v1963_v43 }
 0x8cc   :  { %1966 = vmatpush3.bf16.msra.mxu0 %v1963_v43 }
 0x8cd   :  { %v1967_v46 = vpack.c.bf16 %v1377_v44, %v1376_v45 }
 0x8cf   :  { %1968 = vmatprep.subr.bf16.mxu0 %v1967_v46 }
 0x8d0   :  { %1970 = vmatpush3.bf16.msra.mxu0 %v1967_v46 }
 0x8d3   :  { %1905 = vmatmul.mubr.msk.f32.vlgmr.msra.gmra.mrb[16].mxu0 %vm237_vm2, %v1702_v47 }
 0x8d4   :  { %1907 = vmatprep.mubr.msk.f32.mxu0 %vm237_vm2, %v1703_v48 }
 0x8d7   :  { %1908 = vmatmul.mubr.msk.f32.gmra.mrb[18].mxu0 %vm237_vm2, %v1704_v49 }
 0x9a6   :  { %v1906_v52 = vpop.f32.mrb[16].mxu0 }
 0x9a7   :  { %v1492_v53 = vadd.f32 %v1906_v52, %v1396_v50  ;;  %v1486_v54 = vpop.f32.mrb[17].mxu0 }
 0x9a8   :  { %v1487_v55 = vadd.f32 %v1486_v54, %v1391_v51 }
 0x9a9   :  { %v1506_v56 = vmax.f32 %v1492_v53, 0.0 }
 0x9aa   :  { %v1505_v58 = vmax.f32 %v1487_v55, 0.0  ;;  %v1909_v59 = vpop.f32.mrb[18].mxu0 }
 0x9ab   :  { %v1502_v61 = vadd.f32 %v1909_v59, %v1406_v57  ;;  %v1496_v62 = vpop.f32.mrb[19].mxu0 }
 0x9ac   :  { %v1972_v63 = vpack.c.bf16 %v1506_v56, %v1505_v58  ;;  %v1497_v1 = vadd.f32 %v1496_v62, %v1401_v60 }
 0x9ad   :  { %v1508_v2 = vmax.f32 %v1502_v61, 0.0 }
 0x9ae   :  { %v1507_v3 = vmax.f32 %v1497_v1, 0.0  ;;  %1973 = vmatpush3.bf16.msra.mxu1 %v1972_v63 }
 0x9af   :  { %1974 = vmatprep.subr.bf16.mxu1 %v1992_v34 }
 0x9b0   :  { %v1975_v5 = vpack.c.bf16 %v1508_v2, %v1507_v3 }
 0x9b2   :  { %1976 = vmatpush3.bf16.msra.mxu1 %v1975_v5 }
 0x9b5   :  { %1919 = vmatmul.mubr.msk.f32.vlgmr.msra.gmra.mrb[18].mxu1 %vm237_vm2, %v1713_v6 }
 0xa88   :  { %v1589_v10 = vpop.f32.mrb[18].mxu1 }
 0xa89   :  { %v1590_v11 = vadd.f32 %v1589_v10, %v1518_v0  ;;  %v1920_v13 = vpop.f32.mrb[19].mxu1 }
 0xa8b   :  { %v1600_v7 = vmul.f32 %v1990_v14, %v1590_v11 }
 0xa8d   :  { %v1601_v34 = vadd.f32 %v1600_v7, %v2386_v12 }
 0xa8f   :  { %1602 = vst [vmem:[%s2447_s10] sm:$0xf] %v1601_v34 }

</bundles_post_ra>
